<compile_context>
chip_gen: v5e
topology: v5e:2x2
jax: 0.10.0
libtpu: 0.0.40
codegen_flags: <defaults>
</compile_context>

<pallas_src>
import functools

import jax
import jax.numpy as jnp
from jax.experimental import pallas as pl
from jax.experimental.pallas import tpu as pltpu

_LANE = 128
_MIB = 1024 * 1024


def _attention_kernel(v_ref, k_ref, q_ref, wv_ref, wk_ref, wq_ref, o_ref, *, hidden_dim):
    # Block shapes: v/k/q refs (bt, S, E) bf16; weights (E, H_pad) bf16; o (bt, S, H_pad) f32.
    bt, s, e = v_ref.shape
    h_pad = wq_ref.shape[1]
    scale = 1.0 / (float(hidden_dim) ** 0.5)

    wv = wv_ref[...]
    wk = wk_ref[...]
    wq = wq_ref[...]

    # Flatten (bt, S, E) -> (bt*S, E): one wide MXU matmul per projection instead of
    # bt narrow ones.  NOTE: the collapse is a free relabelling only when S is a
    # multiple of the sublane pack (16 for bf16); otherwise Mosaic inserts a small
    # VMEM relayout copy (correctness unaffected).
    v2d = v_ref[...].reshape(bt * s, e)
    k2d = k_ref[...].reshape(bt * s, e)
    q2d = q_ref[...].reshape(bt * s, e)

    # bf16 operands, f32 accumulation on the MXU.
    V = jnp.dot(v2d, wv, preferred_element_type=jnp.float32).reshape(bt, s, h_pad)
    K = jnp.dot(k2d, wk, preferred_element_type=jnp.float32).reshape(bt, s, h_pad)
    # Fold the 1/sqrt(H) scaling into Q (cheaper than scaling the (S, S) scores).
    Q = (jnp.dot(q2d, wq, preferred_element_type=jnp.float32) * scale).reshape(bt, s, h_pad)

    # Scaled dot-product scores: contract the (padded) hidden dim, batched over bt.
    # Zero padding columns contribute nothing.  No explicit K.T -> no XLU transpose.
    scores = jnp.einsum(
        "bqh,bkh->bqk",
        Q.astype(jnp.bfloat16),
        K.astype(jnp.bfloat16),
        preferred_element_type=jnp.float32,
    )

    # TODO(synk): optional `mask` argument of the PyTorch forward is not plumbed
    # through (mask=None path only).

    # Numerically stable softmax over the key axis, all in f32.
    scores = scores - jnp.max(scores, axis=-1, keepdims=True)
    p = jnp.exp(scores)
    attn = p * pl.reciprocal(jnp.sum(p, axis=-1, keepdims=True), approx=True)

    # (bt, S, S) @ (bt, S, H_pad) -> (bt, S, H_pad), bf16 operands + f32 accumulation.
    out = jnp.einsum(
        "bqk,bkh->bqh",
        attn.astype(jnp.bfloat16),
        V.astype(jnp.bfloat16),
        preferred_element_type=jnp.float32,
    )
    o_ref[...] = out.astype(o_ref.dtype)


def _vmem_capacity_bytes(default=64 * _MIB):
    # v5e/v6e: 128 MiB physical, v7x: 64 MiB.  Fall back to the smallest (v7x-safe).
    try:
        cap = getattr(pltpu.get_tpu_info(), "vmem_capacity_bytes", None)
        if cap:
            return int(cap)
    except Exception:
        pass
    return default


def _pick_batch_block(B, S, E, H_pad, vmem_limit):
    # Per-batch-row VMEM footprint (bytes) of one grid step.
    per_row = (
        3 * S * E * 2 * 2        # bf16 v/k/q input tiles, double-buffered
        + S * H_pad * 4 * 2      # f32 output tile, double-buffered
        + 3 * S * H_pad * 4      # Q/K/V f32 intermediates
        + 2 * S * S * 4          # scores + exp(scores) f32
        + S * H_pad * 4          # attn@V result before the store
    )
    weight_bytes = 3 * E * H_pad * 2 * 2   # bf16 weights, double-buffered
    budget = max(vmem_limit // 2 - weight_bytes, per_row)
    bt_vmem = max(1, budget // per_row)
    # Target ~1024 rows per projection matmul (measured 85%+ of HBM roofline),
    # capped by VMEM and by B.
    bt_target = max(1, 1024 // S)
    bt = int(min(B, bt_target, bt_vmem))
    # Keep >= 2 "parallel" grid steps whenever possible so v7x's two TensorCores
    # (megacore) both get work.
    if B >= 2:
        bt = min(bt, max(1, B // 2))
    while B % bt:
        bt -= 1
    return bt


def attention_pallas(values, keys, queries, wq, wk, wv, *, batch_block=None):
    """values/keys/queries: (B, S, E); wq/wk/wv: (E, H). Returns (B, S, H) float32."""
    B, S, E = values.shape
    H = wq.shape[1]
    out_dtype = values.dtype

    # Lane-dense hidden dim: pad weight columns (and hence Q/K/V/output) to a
    # multiple of 128 lanes.
    H_pad = pl.cdiv(H, _LANE) * _LANE

    def pad_w(w):
        w = w.astype(jnp.bfloat16)
        if H_pad != H:
            w = jnp.pad(w, ((0, 0), (0, H_pad - H)))
        return w

    wq_p, wk_p, wv_p = pad_w(wq), pad_w(wk), pad_w(wv)

    # bf16 sequence operands: native MXU dtype, half the HBM->VMEM DMA bytes.
    values_b = values.astype(jnp.bfloat16)
    keys_b = keys.astype(jnp.bfloat16)
    queries_b = queries.astype(jnp.bfloat16)

    vmem_cap = _vmem_capacity_bytes()
    vmem_limit = int(min(vmem_cap * 3 // 4, 96 * _MIB))

    if batch_block is None:
        batch_block = _pick_batch_block(B, S, E, H_pad, vmem_limit)
    grid = (B // batch_block,)

    kernel = functools.partial(_attention_kernel, hidden_dim=H)

    seq_spec = pl.BlockSpec((batch_block, S, E), lambda b: (b, 0, 0))
    # Weight index_map is constant, so the tile is fetched once and reused across
    # the grid.  (pipeline_mode=pl.Buffered(1) would also drop the second buffer;
    # negligible at E=H=32 so left at the default for robustness.)
    w_spec = pl.BlockSpec((E, H_pad), lambda b: (0, 0))
    out_spec = pl.BlockSpec((batch_block, S, H_pad), lambda b: (b, 0, 0))

    # Advisory cost estimate: 3 projections + QK^T + attn@V, exp per score.
    flops = 6 * B * S * E * H_pad + 4 * B * S * S * H_pad
    transcendentals = B * S * S
    bytes_accessed = 2 * (3 * B * S * E + 3 * E * H_pad) + 4 * B * S * H_pad

    out_padded = pl.pallas_call(
        kernel,
        out_shape=jax.ShapeDtypeStruct((B, S, H_pad), out_dtype),
        grid_spec=pltpu.PrefetchScalarGridSpec(
            num_scalar_prefetch=0,
            grid=grid,
            in_specs=[seq_spec, seq_spec, seq_spec, w_spec, w_spec, w_spec],
            out_specs=out_spec,
        ),
        compiler_params=pltpu.CompilerParams(
            dimension_semantics=("parallel",),
            vmem_limit_bytes=vmem_limit,
        ),
        cost_estimate=pl.CostEstimate(
            flops=flops,
            transcendentals=transcendentals,
            bytes_accessed=bytes_accessed,
        ),
    )(values_b, keys_b, queries_b, wv_p, wk_p, wq_p)

    return out_padded if H_pad == H else out_padded[..., :H]


def attention_reference(values, keys, queries, wq, wk, wv):
    V = values @ wv
    K = keys @ wk
    Q = queries @ wq
    H = wq.shape[1]
    s = jnp.einsum("bqh,bkh->bqk", Q, K) / (H ** 0.5)
    a = jax.nn.softmax(s, axis=-1)
    return jnp.einsum("bqk,bkh->bqh", a, V)


if __name__ == "__main__":
    # Small shapes consistent with the module: batch=2, seq_len=8, embed_dim=32, hidden_dim=32.
    B, S, E, H = 2, 8, 32, 32

    key = jax.random.PRNGKey(0)
    kv, kk, kq, kwq, kwk, kwv = jax.random.split(key, 6)

    values = jax.random.normal(kv, (B, S, E), dtype=jnp.float32)
    keys = jax.random.normal(kk, (B, S, E), dtype=jnp.float32)
    queries = jax.random.normal(kq, (B, S, E), dtype=jnp.float32)

    # Deterministic "Kaiming-uniform-like" init for the nn.Linear weights (bias=False).
    # nn.Linear.weight has shape (H, E); we store the transpose (E, H) for x @ W.T.
    bound = 1.0 / (E ** 0.5)
    wq = jax.random.uniform(kwq, (E, H), minval=-bound, maxval=bound, dtype=jnp.float32)
    wk = jax.random.uniform(kwk, (E, H), minval=-bound, maxval=bound, dtype=jnp.float32)
    wv = jax.random.uniform(kwv, (E, H), minval=-bound, maxval=bound, dtype=jnp.float32)

    out = attention_pallas(values, keys, queries, wq, wk, wv)
    out = jax.block_until_ready(out)

    ref = attention_reference(values, keys, queries, wq, wk, wv)
    assert out.shape == (B, S, H)
    # Tolerance accounts for bf16 MXU operands (f32 accumulation) and the EUP
    # approximate reciprocal in the softmax denominator.
    assert jnp.allclose(out, ref, atol=2e-2, rtol=2e-2), "mismatch vs reference"

    print("KERNEL_OK")
</pallas_src>

<mosaic_0001>
module attributes {stable_mosaic.version = 11 : i64} {
  func.func @_attention_kernel(%arg0: i32, %arg1: memref<1x8x32xbf16, #tpu.memory_space<vmem>>, %arg2: memref<1x8x32xbf16, #tpu.memory_space<vmem>>, %arg3: memref<1x8x32xbf16, #tpu.memory_space<vmem>>, %arg4: memref<32x128xbf16, #tpu.memory_space<vmem>>, %arg5: memref<32x128xbf16, #tpu.memory_space<vmem>>, %arg6: memref<32x128xbf16, #tpu.memory_space<vmem>>, %arg7: memref<1x8x128xf32, #tpu.memory_space<vmem>>) attributes {dimension_semantics = [#tpu.dimension_semantics<parallel>], iteration_bounds = array<i64: 2>, scalar_prefetch = 0 : i64, scratch_operands = 0 : i64, tpu.core_type = #tpu.core_type<tc>, window_params = [{transform_indices = @transform_0, window_bounds = array<i64: 1, 8, 32>}, {transform_indices = @transform_1, window_bounds = array<i64: 1, 8, 32>}, {transform_indices = @transform_2, window_bounds = array<i64: 1, 8, 32>}, {pipeline_mode = #tpu.pipeline_mode<synchronous>, transform_indices = @transform_3, window_bounds = array<i64: 32, 128>}, {pipeline_mode = #tpu.pipeline_mode<synchronous>, transform_indices = @transform_4, window_bounds = array<i64: 32, 128>}, {pipeline_mode = #tpu.pipeline_mode<synchronous>, transform_indices = @transform_5, window_bounds = array<i64: 32, 128>}, {transform_indices = @transform_6, window_bounds = array<i64: 1, 8, 128>}]} {
    %c0 = arith.constant 0 : index
    %c0_0 = arith.constant 0 : index
    %0 = vector.load %arg4[%c0, %c0_0] : memref<32x128xbf16, #tpu.memory_space<vmem>>, vector<32x128xbf16>
    %c0_1 = arith.constant 0 : index
    %c0_2 = arith.constant 0 : index
    %1 = vector.load %arg5[%c0_1, %c0_2] : memref<32x128xbf16, #tpu.memory_space<vmem>>, vector<32x128xbf16>
    %c0_3 = arith.constant 0 : index
    %c0_4 = arith.constant 0 : index
    %2 = vector.load %arg6[%c0_3, %c0_4] : memref<32x128xbf16, #tpu.memory_space<vmem>>, vector<32x128xbf16>
    %c0_5 = arith.constant 0 : index
    %c0_6 = arith.constant 0 : index
    %c0_7 = arith.constant 0 : index
    %3 = vector.load %arg1[%c0_5, %c0_6, %c0_7] : memref<1x8x32xbf16, #tpu.memory_space<vmem>>, vector<1x8x32xbf16>
    %4 = vector.shape_cast %3 : vector<1x8x32xbf16> to vector<8x32xbf16>
    %c0_8 = arith.constant 0 : index
    %c0_9 = arith.constant 0 : index
    %c0_10 = arith.constant 0 : index
    %5 = vector.load %arg2[%c0_8, %c0_9, %c0_10] : memref<1x8x32xbf16, #tpu.memory_space<vmem>>, vector<1x8x32xbf16>
    %6 = vector.shape_cast %5 : vector<1x8x32xbf16> to vector<8x32xbf16>
    %c0_11 = arith.constant 0 : index
    %c0_12 = arith.constant 0 : index
    %c0_13 = arith.constant 0 : index
    %7 = vector.load %arg3[%c0_11, %c0_12, %c0_13] : memref<1x8x32xbf16, #tpu.memory_space<vmem>>, vector<1x8x32xbf16>
    %8 = vector.shape_cast %7 : vector<1x8x32xbf16> to vector<8x32xbf16>
    %cst = arith.constant dense<0.000000e+00> : vector<8x128xf32>
    %9 = tpu.matmul %4, %0, %cst {dimension_numbers = #tpu.dot_dimension_numbers<[1], [0], [0], [1], [0, 0, 1, 1], [], []>} : vector<8x32xbf16>, vector<32x128xbf16>, vector<8x128xf32> -> vector<8x128xf32>
    %10 = vector.shape_cast %9 : vector<8x128xf32> to vector<1x8x128xf32>
    %cst_14 = arith.constant dense<0.000000e+00> : vector<8x128xf32>
    %11 = tpu.matmul %6, %1, %cst_14 {dimension_numbers = #tpu.dot_dimension_numbers<[1], [0], [0], [1], [0, 0, 1, 1], [], []>} : vector<8x32xbf16>, vector<32x128xbf16>, vector<8x128xf32> -> vector<8x128xf32>
    %12 = vector.shape_cast %11 : vector<8x128xf32> to vector<1x8x128xf32>
    %cst_15 = arith.constant dense<0.000000e+00> : vector<8x128xf32>
    %13 = tpu.matmul %8, %2, %cst_15 {dimension_numbers = #tpu.dot_dimension_numbers<[1], [0], [0], [1], [0, 0, 1, 1], [], []>} : vector<8x32xbf16>, vector<32x128xbf16>, vector<8x128xf32> -> vector<8x128xf32>
    %cst_16 = arith.constant 0.176776692 : f32
    %14 = vector.broadcast %cst_16 : f32 to vector<8x128xf32>
    %15 = arith.mulf %13, %14 : vector<8x128xf32>
    %16 = vector.shape_cast %15 : vector<8x128xf32> to vector<1x8x128xf32>
    %17 = arith.truncf %16 : vector<1x8x128xf32> to vector<1x8x128xbf16>
    %18 = arith.truncf %12 : vector<1x8x128xf32> to vector<1x8x128xbf16>
    "tpu.trace_start"() <{level = 10 : i32, message = "bqh,bkh->bqk"}> : () -> ()
    %cst_17 = arith.constant dense<0.000000e+00> : vector<1x8x8xf32>
    %19 = tpu.matmul %17, %18, %cst_17 {dimension_numbers = #tpu.dot_dimension_numbers<[2], [2], [1], [1], [0, 0, 0, 1, 1, 1], [0], [0]>} : vector<1x8x128xbf16>, vector<1x8x128xbf16>, vector<1x8x8xf32> -> vector<1x8x8xf32>
    "tpu.trace_stop"() : () -> ()
    %cst_18 = arith.constant dense<0xFF800000> : vector<1x8xf32>
    %20 = vector.multi_reduction <maximumf>, %19, %cst_18 [2] : vector<1x8x8xf32> to vector<1x8xf32>
    %21 = vector.shape_cast %20 : vector<1x8xf32> to vector<1x8x1xf32>
    %22 = vector.broadcast %21 : vector<1x8x1xf32> to vector<1x8x8xf32>
    %23 = arith.subf %19, %22 : vector<1x8x8xf32>
    %24 = math.exp %23 : vector<1x8x8xf32>
    %cst_19 = arith.constant dense<0.000000e+00> : vector<1x8xf32>
    %25 = vector.multi_reduction <add>, %24, %cst_19 [2] : vector<1x8x8xf32> to vector<1x8xf32>
    %26 = vector.shape_cast %25 : vector<1x8xf32> to vector<1x8x1xf32>
    %27 = tpu.reciprocal %26 {approx = true} : vector<1x8x1xf32> -> vector<1x8x1xf32>
    %28 = vector.broadcast %27 : vector<1x8x1xf32> to vector<1x8x8xf32>
    %29 = arith.mulf %24, %28 : vector<1x8x8xf32>
    %30 = arith.truncf %29 : vector<1x8x8xf32> to vector<1x8x8xbf16>
    %31 = arith.truncf %10 : vector<1x8x128xf32> to vector<1x8x128xbf16>
    "tpu.trace_start"() <{level = 10 : i32, message = "bqk,bkh->bqh"}> : () -> ()
    %cst_20 = arith.constant dense<0.000000e+00> : vector<1x8x128xf32>
    %32 = tpu.matmul %30, %31, %cst_20 {dimension_numbers = #tpu.dot_dimension_numbers<[2], [1], [1], [2], [0, 0, 0, 1, 1, 2], [0], [0]>} : vector<1x8x8xbf16>, vector<1x8x128xbf16>, vector<1x8x128xf32> -> vector<1x8x128xf32>
    "tpu.trace_stop"() : () -> ()
    %c0_21 = arith.constant 0 : index
    %c0_22 = arith.constant 0 : index
    %c0_23 = arith.constant 0 : index
    %33 = vector.load %arg7[%c0_21, %c0_22, %c0_23] : memref<1x8x128xf32, #tpu.memory_space<vmem>>, vector<1x8x128xf32>
    tpu.vector_store %arg7[%c0_21, %c0_22, %c0_23], %32 {strides = array<i32>} : memref<1x8x128xf32, #tpu.memory_space<vmem>>, vector<1x8x128xf32>,
    return
  }
  func.func @transform_0(%arg0: i32) -> (i32, i32, i32) {
    %c0_i32 = arith.constant 0 : i32
    %c0_i32_0 = arith.constant 0 : i32
    %c0_i32_1 = arith.constant 0 : i32
    return %arg0, %c0_i32, %c0_i32_0 : i32, i32, i32
  }
  func.func @transform_1(%arg0: i32) -> (i32, i32, i32) {
    %c0_i32 = arith.constant 0 : i32
    %c0_i32_0 = arith.constant 0 : i32
    %c0_i32_1 = arith.constant 0 : i32
    return %arg0, %c0_i32, %c0_i32_0 : i32, i32, i32
  }
  func.func @transform_2(%arg0: i32) -> (i32, i32, i32) {
    %c0_i32 = arith.constant 0 : i32
    %c0_i32_0 = arith.constant 0 : i32
    %c0_i32_1 = arith.constant 0 : i32
    return %arg0, %c0_i32, %c0_i32_0 : i32, i32, i32
  }
  func.func @transform_3(%arg0: i32) -> (i32, i32) {
    %c0_i32 = arith.constant 0 : i32
    %c0_i32_0 = arith.constant 0 : i32
    %c0_i32_1 = arith.constant 0 : i32
    return %c0_i32, %c0_i32_0 : i32, i32
  }
  func.func @transform_4(%arg0: i32) -> (i32, i32) {
    %c0_i32 = arith.constant 0 : i32
    %c0_i32_0 = arith.constant 0 : i32
    %c0_i32_1 = arith.constant 0 : i32
    return %c0_i32, %c0_i32_0 : i32, i32
  }
  func.func @transform_5(%arg0: i32) -> (i32, i32) {
    %c0_i32 = arith.constant 0 : i32
    %c0_i32_0 = arith.constant 0 : i32
    %c0_i32_1 = arith.constant 0 : i32
    return %c0_i32, %c0_i32_0 : i32, i32
  }
  func.func @transform_6(%arg0: i32) -> (i32, i32, i32) {
    %c0_i32 = arith.constant 0 : i32
    %c0_i32_0 = arith.constant 0 : i32
    %c0_i32_1 = arith.constant 0 : i32
    return %arg0, %c0_i32, %c0_i32_0 : i32, i32, i32
  }
}

</mosaic_0001>

<bundles_post_ra>
// kernel: tpu_custom_call.1
= control target key start
LH: loop header
LB: loop body
LE: loop exit
PB: predicated region body
PF: predicated region fallthrough
CT: control target
= control target key end

     0   :  { %s1389_s0 = inlined_call_operand.hbm [shape: bf16[2,8,32], index: 0, kind: input, shape index: {}]   ;;  %s1390_s1 = inlined_call_operand.hbm [shape: bf16[2,8,32], index: 1, kind: input, shape index: {}]   ;;  %s1391_s2 = inlined_call_operand.hbm [shape: bf16[2,8,32], index: 2, kind: input, shape index: {}]   ;;  %s1392_s3 = inlined_call_operand.hbm [shape: bf16[32,128], index: 3, kind: input, shape index: {}]   ;;  %s1393_s4 = inlined_call_operand.hbm [shape: bf16[32,128], index: 4, kind: input, shape index: {}]   ;;  %s1394_s5 = inlined_call_operand.hbm [shape: bf16[32,128], index: 5, kind: input, shape index: {}]   ;;  %s1395_s6 = inlined_call_operand.hbm [shape: f32[2,8,128], index: 6, kind: output, shape index: {}]  }
   0x1   :  { %1406 = sst [smem:[#allocation23_spill]] %s1390_s1 }
   0x2   :  { %1407 = sst [smem:[#allocation24_spill]] %s1392_s3 }
   0x3   :  { %11 = vsyncpa [#allocation3], 0 }
   0x4   :  { %13 = vsyncpa [#allocation3 + $0x1], 0 }
   0x5   :  { %14 = vsyncpa [#allocation6], 0 }
   0x6   :  { %16 = vsyncpa [#allocation6 + $0x1], 0 }
   0x7   :  { %17 = vsyncpa [#allocation9], 0 }
   0x8   :  { %18 = vsyncpa [#allocation12], 0 }
   0x9   :  { %19 = vsyncpa [#allocation4], 0 }
   0xa   :  { %21 = vsyncpa [#allocation4 + $0x1], 0  ;;  %s1155_s21 = smov 0   ;;  %s1157_s22 = smov 0  }
   0xb   :  { %s1159_s23 = smov 0   ;;  %s1161_s24 = smov 0  }
   0xc LB: > { %1408 = sst [smem:[#allocation19_spill]] %s1113_s24  ;;  %s1179_s28 = sadd.s32 4294967295, %s1113_s24   ;;  %s1113_s24 = sphi %s1161_s24, %s1430_s24   ;;  %s1109_s23 = sphi %s1159_s23, %s1434_s23   ;;  %s1105_s22 = sphi %s1157_s22, %s1433_s22   ;;  %s1101_s21 = sphi %s1155_s21, %s1432_s21  }
   0xd   : > { %s1409_s3 = sld [smem:[#allocation24_spill]]  ;;  %p705_p0 = scmp.ge.s32.totalorder %s1113_s24, 1 }
   0xe   : > { %p1405_p1 = scmp.eq.s32.totalorder %s1179_s28, 0  ;;  %p199_p2 = scmp.lt.s32.totalorder %s1113_s24, 3 }
   0xf   : > { %s1115_s30 = smov [#allocation8]   ;;  %s1396_s9 = smov 64  }
  0x10   : > { %p1184_p3 = pnand %p705_p0, %p199_p2  ;;  %s212_s7 = sshll.u32 %s1115_s30, 4  ;;  %s213_s7 = int_to_ptr.vmem [resolvable:$true] %s212_s7 }
  0x11   : > { %s1399_s10 = smov 4   ;;  %s704_s11 = sadd.s32 4294967294, %s1113_s24  }
  0x12   : > { %p782_p4 = pneg %p1184_p3  ;;  %s1204_s12 = sadd.s32 1, %s1113_s24  }
  0x13   : > { %s210_s27 = sshll.u32 %s1409_s3, 4  ;;  %1412 = sst [smem:[#allocation20_spill]] %s1204_s12  ;;  %s211_s27 = int_to_ptr.hbm [resolvable:$true] %s210_s27 }
  0x14   : > { %p1193_p6 = pnand %p782_p4, %p1405_p1  ;;  %s34_s13 = sadd.s32 1, %s1109_s23 }
  0x15   : > { %s31_s14 = ssub.s32 %s1113_s24, %s1204_s12  ;;  %p41_p7 = scmp.ne.s32.totalorder %s1109_s23, %s1105_s22 }
  0x16   : > { %785 = dma.hbm_to_vmem [thread:$0]  (!%p1193_p6), %s211_s27, 256, %s213_s7, [#allocation9], %s1396_s9, %s1396_s9, %s1399_s10  }
  0x17   : > { %p32_p8 = scmp.eq.s32.totalorder %s31_s14, 0  ;;  %p42_p9 = scmp.eq.s32.totalorder %s1113_s24, 0 }
  0x18   : > { %p47_p10 = scmp.ne.s32.totalorder %s1105_s22, %s1101_s21  ;;  %p186_p11 = scmp.eq.s32.totalorder %s1179_s28, 1 }
  0x19   : > { %s1216_s15 = scalar_select %p32_p8, %s1109_s23, %s34_s13  }
  0x1a   : > { %p43_p12 = por %p42_p9, %p41_p7  ;;  %p1220_p13 = por %p1405_p1, %p47_p10 }
  0x1b   : > { %1413 = sst [smem:[#allocation21_spill]] %s1216_s15  ;;  %p1224_p0 = por %p186_p11, %p41_p7 }
  0x1c   : > { %p192_p2 = scmp.eq.s32.totalorder %s704_s11, 1  ;;  %p809_p4 = scmp.lt.s32.totalorder %s1113_s24, 2 }
  0x1d   : > { %s1398_s18 = sand.u32 1, %s1109_s23   ;;  %s1239_s25 = sshll.u32 %s1113_s24, 2 }
  0x1e   : > { %p1230_p5 = por %p192_p2, %p47_p10  ;;  %s1236_s20 = sshll.u32 %s1398_s18, 2 }
  0x1f   : > { %p1241_p8 = pnand %p809_p4, %p43_p12  ;;  %s273_s27 = sand.u32 1, %s1113_s24  }
  0x20   : > { %s1416_s19 = scalar_select %p1230_p5, 1, 0 }
  0x21   : > { %s1419_s1 = sld [smem:[#allocation23_spill]]  ;;  %s277_s13 = scalar_lea.vmem [#allocation5], %s1236_s20 }
  0x22   : > { %1417 = sst [smem:[#allocation22_spill]] %s1416_s19  ;;  %s285_s14 = sshll.u32 %s277_s13, 4  ;;  %s286_s14 = int_to_ptr.vmem [resolvable:$true] %s285_s14 }
  0x23   : > { %s224_s3 = sshll.u32 %s1393_s4, 4  ;;  %s1254_s15 = scalar_lea.sflag [#allocation6], %s273_s27  ;;  %s225_s3 = int_to_ptr.hbm [resolvable:$true] %s224_s3 }
  0x24   : > { %p889_p9 = pneg %p1241_p8 }
  0x27   : > { %s281_s11 = scalar_lea.hbm %s1419_s1, %s1239_s25 }
  0x28   : > { %s283_s9 = sshll.u32 %s281_s11, 4  ;;  %s892_s11 = scalar_lea.hbm %s1419_s1, 8  ;;  %s284_s9 = int_to_ptr.hbm [resolvable:$true] %s283_s9 }
  0x29   : > { %s885_s12 = sshra.s32 %s284_s9, 4  ;;  %s886_s12 = int_to_ptr.hbm [resolvable:$true] %s885_s12 }
  0x2a   : > { %s887_s19 = scalar_lea.hbm %s886_s12, 4  ;;  %p893_p12 = scmp.lt.s32.totalorder %s886_s12, %s1419_s1 }
  0x2b   : > { %p888_p7 = scmp.ne.s32.totalorder %s886_s12, %s887_s19  ;;  %p894_p2 = scmp.lt.s32.totalorder %s892_s11, %s887_s19 }
  0x2d   : > { %p890_p10 = pnand %p889_p9, %p888_p7  ;;  %p895_p4 = por %p894_p2, %p893_p12 }
  0x2f   : > { %p891_p11 = pneg %p890_p10 }
  0x31   : > { %p896_p1 = pnand %p895_p4, %p891_p11 }
  0x33   : > { %899 = shalt.err (!%p896_p1)
}
  0x34   : > { %798 = dma.hbm_to_vmem [thread:$0]  (!%p1241_p8), %s284_s9, 64, %s286_s14, %s1254_s15  }
  0x35   : > { %s1118_s10 = smov [#allocation10]   ;;  %s238_s24 = sshll.u32 %s1394_s5, 4  ;;  %s239_s24 = int_to_ptr.hbm [resolvable:$true] %s238_s24 }
  0x36   : > { %s226_s18 = sshll.u32 %s1118_s10, 4  ;;  %s1420_s12 = smov 4   ;;  %s227_s18 = int_to_ptr.vmem [resolvable:$true] %s226_s18 }
  0x37   : > { %s1421_s19 = smov 64   ;;  %s1119_s7 = smov [#allocation11]  }
  0x38   : > { %788 = dma.hbm_to_vmem [thread:$0]  (!%p1193_p6), %s225_s3, 256, %s227_s18, [#allocation9], %s1421_s19, %s1421_s19, %s1420_s12  }
  0x39   : > { %s240_s11 = sshll.u32 %s1119_s7, 4  ;;  %s262_s13 = scalar_lea.hbm %s1389_s0, %s1239_s25  ;;  %s241_s11 = int_to_ptr.vmem [resolvable:$true] %s240_s11 }
  0x3a   : > { %791 = dma.hbm_to_vmem [thread:$0]  (!%p1193_p6), %s239_s24, 256, %s241_s11, [#allocation12], %s1421_s19, %s1421_s19, %s1420_s12  }
  0x3b   : > { %s264_s10 = sshll.u32 %s262_s13, 4  ;;  %s258_s27 = scalar_lea.vmem [#allocation2], %s1236_s20  ;;  %s265_s10 = int_to_ptr.hbm [resolvable:$true] %s264_s10 }
  0x3c   : > { %s266_s30 = sshll.u32 %s258_s27, 4  ;;  %s1422_s1 = sand.u32 1, %s1109_s23   ;;  %s267_s30 = int_to_ptr.vmem [resolvable:$true] %s266_s30 }
  0x3d   : > { %s255_s3 = scalar_lea.sflag [#allocation3], %s1422_s1  ;;  %s975_s18 = sshra.s32 %s265_s10, 4  ;;  %s976_s18 = int_to_ptr.hbm [resolvable:$true] %s975_s18 }
  0x3e   : > { %s977_s7 = scalar_lea.hbm %s976_s18, 4  ;;  %s982_s14 = scalar_lea.hbm %s1389_s0, 8 }
  0x3f   : > { %p978_p1 = scmp.ne.s32.totalorder %s976_s18, %s977_s7  ;;  %p983_p6 = scmp.lt.s32.totalorder %s976_s18, %s1389_s0 }
  0x40   : > { %p984_p11 = scmp.lt.s32.totalorder %s982_s14, %s977_s7 }
  0x41   : > { %p980_p7 = pnand %p978_p1, %p889_p9 }
  0x42   : > { %p985_p12 = por %p984_p11, %p983_p6 }
  0x43   : > { %p981_p10 = pneg %p980_p7 }
  0x45   : > { %p986_p2 = pnand %p985_p12, %p981_p10 }
  0x47   : > { %989 = shalt.err (!%p986_p2)
}
  0x48   : > { %795 = dma.hbm_to_vmem [thread:$0]  (!%p1241_p8), %s265_s10, 64, %s267_s30, %s255_s3  }
  0x49   : > { %s300_s11 = scalar_lea.hbm %s1391_s2, %s1239_s25  ;;  %s296_s27 = scalar_lea.vmem [#allocation7], %s1236_s20 }
  0x4a   : > { %s302_s13 = sshll.u32 %s300_s11, 4  ;;  %s304_s8 = sshll.u32 %s296_s27, 4  ;;  %s303_s13 = int_to_ptr.hbm [resolvable:$true] %s302_s13  ;;  %s305_s8 = int_to_ptr.vmem [resolvable:$true] %s304_s8 }
  0x4b   : > { %s1005_s18 = sshra.s32 %s303_s13, 4  ;;  %s1012_s10 = scalar_lea.hbm %s1391_s2, 8  ;;  %s1006_s18 = int_to_ptr.hbm [resolvable:$true] %s1005_s18 }
  0x4c   : > { %s1007_s7 = scalar_lea.hbm %s1006_s18, 4  ;;  %p1013_p10 = scmp.lt.s32.totalorder %s1006_s18, %s1391_s2 }
  0x4d   : > { %p1008_p4 = scmp.ne.s32.totalorder %s1006_s18, %s1007_s7  ;;  %p1014_p6 = scmp.lt.s32.totalorder %s1012_s10, %s1007_s7 }
  0x4f   : > { %p1010_p1 = pnand %p1008_p4, %p889_p9  ;;  %p1015_p11 = por %p1014_p6, %p1013_p10 }
  0x51   : > { %p1011_p7 = pneg %p1010_p1 }
  0x53   : > { %p1016_p12 = pnand %p1015_p11, %p1011_p7 }
  0x55   : > { %1019 = shalt.err (!%p1016_p12)
}
  0x56   : > { %801 = dma.hbm_to_vmem [thread:$0]  (!%p1241_p8), %s303_s13, 64, %s305_s8, %s1254_s15  }
  0x57   : > { %313 = sbr.rel (%p1184_p3) target bundleno = 768 (0x300), region = 44  ;;  %s1321_s20 = sand.u32 (!%p1184_p3), 1, %s1105_s22  }
  0x58   : > { %s1324_s25 = sshll.u32 (!%p1184_p3), %s1321_s20, 2  ;;  %s316_s24 = scalar_lea.sflag (!%p1184_p3), [#allocation3], %s1321_s20 }
  0x59   : > { %s319_s12 = scalar_lea.vmem (!%p1184_p3), [#allocation2], %s1324_s25 }
  0x5c   : > { %1080 = dma.done.wait (%p1220_p13), %s316_s24, 64  }
  0x5d   : > { %1082 = vsyncadd (%p1220_p13), %s316_s24, 4294967232  ;;  %s325_s29 = sand.u32 1, %s1179_s28   ;;  %s329_s26 = scalar_lea.vmem [#allocation5], %s1324_s25 }
  0x5e   : > { %s326_s15 = scalar_lea.sflag [#allocation6], %s325_s29 }
  0x5f   : > { %1084 = dma.done.wait (%p1220_p13), %s326_s15, 128  }
  0x60   : > { %1086 = vsyncadd (%p1220_p13), %s326_s15, 4294967168  ;;  %s339_s1 = scalar_lea.vmem [#allocation7], %s1324_s25  ;;  %p1423_p3 = scmp.eq.s32.totalorder %s1179_s28, 0 }
  0x62   : > { %1088 = dma.done.wait (%p1423_p3), [#allocation9], 512   ;;  %p1424_p8 = pmov %p1423_p3 }
  0x63   : > { %p1425_p9 = pmov %p1423_p3 }
  0x64   : > { %1090 = vsyncadd (%p1424_p8), [#allocation9], 4294966784 }
  0x65   : > { %1092 = dma.done.wait (%p1425_p9), [#allocation12], 256   ;;  %p1426_p2 = pmov %p1423_p3 }
  0x66   : > { %v759_v0 = vld [vmem:[#allocation10 + $0x8] sm:$0xff]  ;;  %v761_v1 = vld [vmem:[#allocation11 + $0x8] sm:$0xff]  ;;  %v758_v2 = vld [vmem:[#allocation10] sm:$0xff]  ;;  %vm422_vm0 = vcmask 261120   ;;  %vm511_vm1 = vcmask 64512   ;;  %vm528_vm2 = vcmask 1043456  }
  0x67   : > { %1094 = vsyncadd (%p1426_p2), [#allocation12], 4294967040  ;;  %460 = vmatpush.bf16.msra.mxu1 %v759_v0  ;;  %488 = vmatpush.bf16.msra.mxu2 %v761_v1  ;;  %v760_v3 = vld [vmem:[#allocation11] sm:$0xff]  ;;  %v408_v4 = vld [vmem:[%s329_s26] sm:$0xf]  ;;  %s753_s16 = sshll.u32 %s1179_s28, 3 }
  0x68   : > { %v409_v5 = vld [vmem:[%s339_s1] sm:$0xf]  ;;  %v757_v13 = vld [vmem:[#allocation8 + $0x8] sm:$0xff]  ;;  %v756_v14 = vld [vmem:[#allocation8] sm:$0xff]  ;;  %s723_s19 = sshll.u32 %s1321_s20, 3  ;;  %s557_s27 = scalar_lea.hbm %s1395_s6, %s753_s16 }
  0x69   : > { %432 = vmatpush.bf16.msra.mxu0 %v757_v13  ;;  %v407_v15 = vld [vmem:[%s319_s12] sm:$0xf]  ;;  %s393_s8 = scalar_lea.vmem [#allocation13], %s723_s19  ;;  %s561_s7 = sshll.u32 %s557_s27, 4  ;;  %s562_s7 = int_to_ptr.hbm [resolvable:$true] %s561_s7 }
  0x6a   : > { %s559_s18 = sshll.u32 %s393_s8, 4  ;;  %s547_s9 = scalar_lea.sflag [#allocation4], %s1321_s20  ;;  %s560_s18 = int_to_ptr.vmem [resolvable:$true] %s559_s18 }
  0x6b   : > { %461 = vmatpush.bf16.msra.mxu1 %v758_v2  ;;  %489 = vmatpush.bf16.msra.mxu2 %v760_v3  ;;  %s1049_s14 = sshra.s32 %s562_s7, 4  ;;  %s1055_s3 = scalar_lea.hbm %s1395_s6, 16  ;;  %s1050_s14 = int_to_ptr.hbm [resolvable:$true] %s1049_s14 }
  0x6c   : > { %s1051_s10 = scalar_lea.hbm %s1050_s14, 8  ;;  %p1056_p7 = scmp.lt.s32.totalorder %s1050_s14, %s1395_s6 }
  0x6d   : > { %433 = vmatpush.bf16.msra.mxu0 %v756_v14  ;;  %p1052_p13 = scmp.ne.s32.totalorder %s1050_s14, %s1051_s10  ;;  %p1057_p10 = scmp.lt.s32.totalorder %s1055_s3, %s1051_s10 }
  0x6e   : > { %741 = vmatmul.msk.bf16.vlgmr.msra.gmra.mxu1 %vm422_vm0, %v408_v4  ;;  %750 = vmatmul.msk.bf16.vlgmr.msra.gmra.mxu2 %vm422_vm0, %v409_v5 }
  0x6f   : > { %p1053_p4 = pnand %p1052_p13, %p1224_p0  ;;  %p1058_p6 = por %p1057_p10, %p1056_p7 }
  0x70   : > { %732 = vmatmul.msk.bf16.vlgmr.msra.gmra.mxu0 %vm422_vm0, %v407_v15 }
  0x71   : > { %p1054_p1 = pneg %p1053_p4 }
  0x73   : > { %p1059_p11 = pnand %p1058_p6, %p1054_p1 }
  0xeb   : > { %v463_v6 = vpop.f32.mrf.mxu1 }
  0xec   : > { %v497_v7 = vpack.c.bf16 %v463_v6, %v463_v6 }
  0xed   : > { %v435_v19 = vpop.f32.mrf.mxu0 }
  0xee   : > { %505 = vmatpush.bf16.xpose.msra.mxu3 %v497_v7  ;;  %v524_v20 = vpack.c.bf16 %v435_v19, %v435_v19 }
  0xf0   : > { %v530_v21 = vsel %vm528_vm2, %v524_v20, 0 }
  0xf1   : > { %v491_v8 = vpop.f32.mrf.mxu2  ;;  %539 = vmatpush.bf16.msrb.mxu0 %v530_v21 }
  0xf2   : > { %v495_v9 = vmul.f32 0.17677669, %v491_v8 }
  0xf3   : > { %v465_v10 = vpop.f32.mrf.mxu1 }
  0xf4   : > { %v496_v11 = vpack.c.bf16 %v495_v9, %v495_v9 }
  0xf5   : > { %v437_v24 = vpop.f32.mrf.mxu0 }
  0xf6   : > { %506 = vmatmul.bf16.vlgmr.msra.gmra.mxu3 %v496_v11 }
  0xf9   : > { %v493_v12 = vpop.f32.mrf.mxu2 }
 0x179   : > { %v507_v16 = vpop.f32.mrf.mxu3 }
 0x17a   : > { %v512_v17 = vsel %vm511_vm1, %v507_v16, -inf }
 0x17b   : > { %513 = vmax.xlane.f32.xlu0 %v512_v17 }
 0x181   : > { %v509_v18 = vpop.f32.mrf.mxu3 }
 0x1ee   : > { %v514_v22 = vpop.xlane.xlu0 %513 }
 0x1ef   : > { %v515_v23 = vsub.f32 %v507_v16, %v514_v22 }
 0x1f1   : > { %v516_v25 = vmul.f32 1.442695, %v515_v23 }
 0x1f3   : > { %851 = vpow2.f32 %v516_v25 }
 0x1f9   : > { %v852_v26 = vpop.eup %851 }
 0x1fa   : > { %v518_v27 = vsel %vm511_vm1, %v852_v26, 0.0 }
 0x1fb   : > { %519 = vadd.xlane.f32.xlu0 %v518_v27 }
 0x26e   : > { %v520_v28 = vpop.xlane.xlu0 %519 }
 0x26f   : > { %853 = vrcp.f32 %v520_v28 }
 0x275   : > { %v854_v29 = vpop.eup %853 }
 0x276   : > { %v522_v30 = vmul.f32 %v854_v29, %v852_v26 }
 0x278   : > { %v523_v31 = vpack.c.bf16 %v522_v30, %v522_v30 }
 0x27a   : > { %751 = vmatmul.msk.bf16.vlgmr.msrb.gmra.mxu0 %vm511_vm1, %v523_v31 }
 0x2f7   : > { %v541_v32 = vpop.f32.mrf.mxu0 }
 0x2f8   : > { %545 = vst [vmem:[%s393_s8] sm:$0xff] %v541_v32 }
 0x2f9   : > { %1062 = shalt.err (!%p1059_p11)
}
 0x2fa   : > { %780 = dma.vmem_to_hbm [thread:$0]  (%p1224_p0), %s560_s18, 128, %s562_s7, %s547_s9  }
 0x2ff   : > { %v543_v33 = vpop.f32.mrf.mxu0 }
 0x300 PF: > { %s1428_s12 = sld [smem:[#allocation19_spill]]  ;;  %s573_s29 = sand.u32 1, %s1101_s21  }
 0x301   : > { %s574_s15 = scalar_lea.sflag [#allocation4], %s573_s29 }
 0x306   : > { %p1429_p12 = scmp.ge.s32.totalorder %s1428_s12, 2 }
 0x308   : > { %p803_p3 = pnand %p1429_p12, %p1230_p5 }
 0x30a   : > { %p804_p8 = pneg %p803_p3 }
 0x30c   : > { %1096 = dma.done.wait (%p804_p8), %s574_s15, 128  }
 0x30d   : > { %1098 = vsyncadd (%p804_p8), %s574_s15, 4294967168  ;;  %s1430_s24 = sld [smem:[#allocation20_spill]]  ;;  %s1432_s21 = smov %s1105_s22 }
 0x30e   : > { %s1431_s26 = sld [smem:[#allocation21_spill]]  ;;  %s1433_s22 = smov %s1109_s23 }
 0x313   : > { %p24_p9 = scmp.ge.s32.totalorder %s1430_s24, 4  }
 0x314   : > { %s1434_s23 = smov %s1431_s26 }
 0x315   :  { %26 = sbr.rel (!%p24_p9) target bundleno = 12 (0xc), region = 125 }
 0x31a   :  { %580 = vsyncpa [#allocation3], 1 }
 0x31b   :  { %582 = vsyncpa [#allocation3 + $0x1], 1 }
 0x31c   :  { %583 = vsyncpa [#allocation6], 1 }
 0x31d   :  { %585 = vsyncpa [#allocation6 + $0x1], 1 }
 0x31e   :  { %586 = vsyncpa [#allocation9], 1 }
 0x31f   :  { %587 = vsyncpa [#allocation12], 1 }
 0x320   :  { %588 = vsyncpa [#allocation4], 1 }
 0x321   :  { %590 = vsyncpa [#allocation4 + $0x1], 1 }

</bundles_post_ra>
